<compile_context>
chip_gen: v5e
topology: v5e:2x2
jax: 0.10.0
libtpu: 0.0.40
codegen_flags: <defaults>
</compile_context>

<pallas_src>
import functools

import numpy as np
import jax
import jax.numpy as jnp
from jax.experimental import pallas as pl
from jax.experimental.pallas import tpu as pltpu

_LOG_2PI = float(np.log(2.0 * np.pi))


def _obs_logprob_kernel(x_ref, mu_ref, inv_scale_ref, out_ref, *, const):
    """x_ref: (F, TILE_L) with batch on lanes; mu/inv_scale: (F, 1); out: (1, TILE_L).

    Computes  const - 0.5 * sum_f ((x - mu) * inv_scale)^2  per batch column, where
    const = sum_f (-log(scale_f) - 0.5*log(2*pi)) is hoisted to the wrapper.
    """
    x = x_ref[...].astype(jnp.float32)              # bf16/f16 inputs upcast in-register
    z = (x - mu_ref[...]) * inv_scale_ref[...]      # (F,1) params lane-broadcast
    out_ref[...] = const - 0.5 * jnp.sum(z * z, axis=0, keepdims=True)


class ObsModelNoFwdMean:
    """JAX/Pallas port of pytorch_sbm_sde_vi.obs_and_flow.ObsModelNoFwdMean."""

    def __init__(self, times, dt, mu, scale):
        self.times = np.asarray(times, dtype=np.float64)
        self.dt = float(dt)
        # rint before the cast: (times/dt) may be inexact in floating point.
        self.idx = np.rint(self.times / self.dt).astype(np.int32)    # (T_obs,)

        mu_np = np.asarray(mu, dtype=np.float32)                      # (D, T_obs)
        self.obs_dim = int(mu_np.shape[0])
        t_obs = int(self.idx.shape[0])
        d = int(mu_np.shape[0])
        self._F = t_obs * d

        mu_td = mu_np.T                                               # (T_obs, D)
        scale_td = np.broadcast_to(
            np.asarray(scale, dtype=np.float32), (t_obs, d)
        ).astype(np.float32)

        # Resident (F, 1) parameter columns (flat index = t*D + d, matching the
        # (T, D, B) -> (F, B) flattening of the gathered observations).
        self.mu_col = jnp.asarray(mu_td.reshape(self._F, 1))
        self.inv_scale_col = jnp.asarray((1.0 / scale_td).reshape(self._F, 1))
        # Data-independent part of the Gaussian log-density, hoisted once.
        self._const = float(np.sum(-np.log(scale_td) - 0.5 * _LOG_2PI))

        # Kept for parity with the PyTorch module (plt_dat etc.).
        self.mu = jnp.asarray(mu_np)
        self.scale = jnp.asarray(np.asarray(scale, dtype=np.float32))

    def plt_dat(self):
        return (self.mu, self.times)

    def __call__(self, x):
        x = jnp.asarray(x)
        if x.dtype not in (jnp.bfloat16, jnp.float16):
            x = x.astype(jnp.float32)
        B = int(x.shape[0])
        F = self._F

        # Glue: gather observed time slices (static indices), then put batch on
        # the lane axis: (B, T, D) -> (T, D, B) -> (F, B).
        xg = jnp.transpose(x[:, self.idx, :], (1, 2, 0)).reshape(F, B)

        # ---- Tile sizing on the batch/lane axis, budgeted by PADDED VMEM bytes ----
        itemsize = int(jnp.dtype(x.dtype).itemsize)
        sub_pack = 8 * (4 // itemsize)                      # 8 for f32, 16 for bf16/f16
        f_sub = -(-F // sub_pack) * sub_pack                # sublane-padded F
        bytes_per_col128 = f_sub * 128 * itemsize           # one 128-lane column of x block
        target_bytes = 4 * 1024 * 1024                      # ~4 MiB per x buffer -> HBM roofline
        max_cols = max(1, target_bytes // bytes_per_col128)

        n_cols = -(-B // 128)                               # 128-lane columns in padded batch
        cols_per_tile = min(max_cols, n_cols)
        if n_cols >= 2:
            # v7x: keep the "parallel" grid >= 2 so both TensorCores get work.
            cols_per_tile = min(cols_per_tile, -(-n_cols // 2))
        tile_lanes = cols_per_tile * 128
        grid_n = -(-n_cols // cols_per_tile)
        b_pad = grid_n * tile_lanes

        if b_pad > B:
            xg = jnp.pad(xg, ((0, 0), (0, b_pad - B)))

        # Explicit scoped-VMEM budget: 2 x-buffers + 2 out-buffers + params + headroom.
        x_block_bytes = f_sub * tile_lanes * itemsize
        out_block_bytes = 8 * tile_lanes * 4
        param_block_bytes = (-(-F // 8) * 8) * 128 * 4
        vmem_limit = (2 * x_block_bytes + 2 * out_block_bytes
                      + 4 * param_block_bytes + (4 << 20))
        vmem_limit = int(min(max(vmem_limit, 16 << 20), 48 << 20))

        out = pl.pallas_call(
            functools.partial(_obs_logprob_kernel, const=self._const),
            out_shape=jax.ShapeDtypeStruct((1, b_pad), jnp.float32),
            grid=(grid_n,),
            in_specs=[
                pl.BlockSpec((F, tile_lanes), lambda i: (0, i)),
                pl.BlockSpec((F, 1), lambda i: (0, 0)),
                pl.BlockSpec((F, 1), lambda i: (0, 0)),
            ],
            out_specs=pl.BlockSpec((1, tile_lanes), lambda i: (0, i)),
            compiler_params=pltpu.CompilerParams(
                dimension_semantics=("parallel",),
                vmem_limit_bytes=vmem_limit,
            ),
        )(xg, self.mu_col, self.inv_scale_col)

        return out[0, :B]                                             # (B,)


def _reference(x, idx, mu, scale):
    """Pure-numpy reference of the PyTorch forward."""
    x = np.asarray(x, dtype=np.float32)
    mu_td = np.asarray(mu, dtype=np.float32).T                        # (T, D)
    scale_td = np.broadcast_to(np.asarray(scale, dtype=np.float32), mu_td.shape)
    xg = x[:, np.asarray(idx), :]                                     # (B, T, D)
    z = (xg - mu_td[None]) / scale_td[None]
    ll = -0.5 * z * z - np.log(scale_td)[None] - 0.5 * _LOG_2PI
    return ll.sum(axis=(-1, -2))


if __name__ == "__main__":
    # Small shapes consistent with the module's forward:
    #   x: (batch=2, n_timesteps=16, obs_dim=3); observations at 4 of the 16 steps.
    B, S, D = 2, 16, 3
    DT = 0.5
    TIMES = np.array([0.0, 2.0, 4.0, 6.0])                            # -> idx [0, 4, 8, 12]
    T_obs = TIMES.shape[0]

    key = jax.random.PRNGKey(0)
    kx, kmu, ks, kx2 = jax.random.split(key, 4)
    x = jax.random.normal(kx, (B, S, D), dtype=jnp.float32)
    MU = jax.random.normal(kmu, (D, T_obs), dtype=jnp.float32)        # deterministic "observations"
    SCALE = 0.5 + jax.nn.softplus(jax.random.normal(ks, (1, D), dtype=jnp.float32))

    model = ObsModelNoFwdMean(TIMES, DT, MU, SCALE)

    out = jax.block_until_ready(model(x))
    ref = _reference(np.asarray(x), np.asarray(model.idx), np.asarray(MU), np.asarray(SCALE))
    np.testing.assert_allclose(np.asarray(out), ref, rtol=1e-5, atol=1e-4)

    # Second check: batch large enough to exercise a multi-tile grid (and padding).
    B2 = 300
    x2 = jax.random.normal(kx2, (B2, S, D), dtype=jnp.float32)
    out2 = jax.block_until_ready(model(x2))
    ref2 = _reference(np.asarray(x2), np.asarray(model.idx), np.asarray(MU), np.asarray(SCALE))
    np.testing.assert_allclose(np.asarray(out2), ref2, rtol=1e-5, atol=1e-4)

    print("KERNEL_OK")
</pallas_src>

<mosaic_0001>
module attributes {stable_mosaic.version = 11 : i64} {
  func.func @_obs_logprob_kernel(%arg0: i32, %arg1: memref<12x128xf32, #tpu.memory_space<vmem>>, %arg2: memref<12x1xf32, #tpu.memory_space<vmem>>, %arg3: memref<12x1xf32, #tpu.memory_space<vmem>>, %arg4: memref<1x128xf32, #tpu.memory_space<vmem>>) attributes {dimension_semantics = [#tpu.dimension_semantics<parallel>], iteration_bounds = array<i64: 1>, scalar_prefetch = 0 : i64, scratch_operands = 0 : i64, tpu.core_type = #tpu.core_type<tc>, window_params = [{transform_indices = @transform_0, window_bounds = array<i64: 12, 128>}, {pipeline_mode = #tpu.pipeline_mode<synchronous>, transform_indices = @transform_1, window_bounds = array<i64: 12, 1>}, {pipeline_mode = #tpu.pipeline_mode<synchronous>, transform_indices = @transform_2, window_bounds = array<i64: 12, 1>}, {transform_indices = @transform_3, window_bounds = array<i64: 1, 128>}]} {
    %c0 = arith.constant 0 : index
    %c0_0 = arith.constant 0 : index
    %0 = vector.load %arg1[%c0, %c0_0] : memref<12x128xf32, #tpu.memory_space<vmem>>, vector<12x128xf32>
    %c0_1 = arith.constant 0 : index
    %c0_2 = arith.constant 0 : index
    %1 = vector.load %arg2[%c0_1, %c0_2] : memref<12x1xf32, #tpu.memory_space<vmem>>, vector<12x1xf32>
    %2 = vector.broadcast %1 : vector<12x1xf32> to vector<12x128xf32>
    %3 = arith.subf %0, %2 : vector<12x128xf32>
    %c0_3 = arith.constant 0 : index
    %c0_4 = arith.constant 0 : index
    %4 = vector.load %arg3[%c0_3, %c0_4] : memref<12x1xf32, #tpu.memory_space<vmem>>, vector<12x1xf32>
    %5 = vector.broadcast %4 : vector<12x1xf32> to vector<12x128xf32>
    %6 = arith.mulf %3, %5 : vector<12x128xf32>
    %7 = arith.mulf %6, %6 : vector<12x128xf32>
    %cst = arith.constant dense<0.000000e+00> : vector<128xf32>
    %8 = vector.multi_reduction <add>, %7, %cst [0] : vector<12x128xf32> to vector<128xf32>
    %9 = vector.shape_cast %8 : vector<128xf32> to vector<1x128xf32>
    %cst_5 = arith.constant 5.000000e-01 : f32
    %10 = vector.broadcast %cst_5 : f32 to vector<1x128xf32>
    %11 = arith.mulf %10, %9 : vector<1x128xf32>
    %cst_6 = arith.constant -16.8489285 : f32
    %12 = vector.broadcast %cst_6 : f32 to vector<1x128xf32>
    %13 = arith.subf %12, %11 : vector<1x128xf32>
    %c0_7 = arith.constant 0 : index
    %c0_8 = arith.constant 0 : index
    %14 = vector.load %arg4[%c0_7, %c0_8] : memref<1x128xf32, #tpu.memory_space<vmem>>, vector<1x128xf32>
    tpu.vector_store %arg4[%c0_7, %c0_8], %13 {strides = array<i32>} : memref<1x128xf32, #tpu.memory_space<vmem>>, vector<1x128xf32>,
    return
  }
  func.func @transform_0(%arg0: i32) -> (i32, i32) {
    %c0_i32 = arith.constant 0 : i32
    %c0_i32_0 = arith.constant 0 : i32
    return %c0_i32, %arg0 : i32, i32
  }
  func.func @transform_1(%arg0: i32) -> (i32, i32) {
    %c0_i32 = arith.constant 0 : i32
    %c0_i32_0 = arith.constant 0 : i32
    %c0_i32_1 = arith.constant 0 : i32
    return %c0_i32, %c0_i32_0 : i32, i32
  }
  func.func @transform_2(%arg0: i32) -> (i32, i32) {
    %c0_i32 = arith.constant 0 : i32
    %c0_i32_0 = arith.constant 0 : i32
    %c0_i32_1 = arith.constant 0 : i32
    return %c0_i32, %c0_i32_0 : i32, i32
  }
  func.func @transform_3(%arg0: i32) -> (i32, i32) {
    %c0_i32 = arith.constant 0 : i32
    %c0_i32_0 = arith.constant 0 : i32
    return %c0_i32, %arg0 : i32, i32
  }
}

</mosaic_0001>

<bundles_post_ra>
// kernel: tpu_custom_call.1
= control target key start
LH: loop header
LB: loop body
LE: loop exit
PB: predicated region body
PF: predicated region fallthrough
CT: control target
= control target key end

     0   :  { %v105_v2 = vmov 0   ;;  %s148_s0 = inlined_call_operand.vmem [shape: f32[12,128], index: 0, kind: input, shape index: {}]   ;;  %s149_s1 = inlined_call_operand.vmem [shape: f32[12,1], index: 1, kind: input, shape index: {}]   ;;  %s150_s2 = inlined_call_operand.vmem [shape: f32[12,1], index: 2, kind: input, shape index: {}]   ;;  %s151_s3 = inlined_call_operand.hbm [shape: f32[1,128], index: 3, kind: output, shape index: {}]  }
   0x1   :  { %v32_v0 = vld [vmem:[%s150_s2 + $0x8] sm:$0xf]  ;;  %78 = vset.pattern.permute.xlu1 %v105_v2  ;;  %77 = vset.pattern.permute.xlu0 %v105_v2 }
   0x2   :  { %v18_v1 = vld [vmem:[%s149_s1 + $0x8] sm:$0xf] }
   0x3   :  { %8 = vsyncpa [#allocation3], 0  ;;  %40 = vperm.xlu1 %78, %v32_v0   ;;  %26 = vperm.xlu0 %77, %v18_v1   ;;  %v31_v3 = vld [vmem:[%s150_s2] sm:$0xff]  ;;  %v16_v5 = vld [vmem:[%s148_s0 + $0x8] sm:$0xf]  ;;  %vm47_vm0 = vcmask 1043456  }
   0x4   :  { %v17_v4 = vld [vmem:[%s149_s1] sm:$0xff]  ;;  %s106_s1 = smov [#allocation2]  }
   0x5   :  { %v15_v10 = vld [vmem:[%s148_s0] sm:$0xff]  ;;  %s64_s2 = sshll.u32 %s106_s1, 4  ;;  %s66_s0 = sshll.u32 %s151_s3, 4  ;;  %s65_s2 = int_to_ptr.vmem [resolvable:$true] %s64_s2  ;;  %s67_s0 = int_to_ptr.hbm [resolvable:$true] %s66_s0 }
   0xb   :  { %35 = vperm.xlu1 %78, %v31_v3   ;;  %21 = vperm.xlu0 %77, %v17_v4  }
  0x75   :  { %v41_v6 = vpop.permute.xlu1 %40  ;;  %v27_v7 = vpop.permute.xlu0 %26 }
  0x76   :  { %v30_v8 = vsub.f32 %v16_v5, %v27_v7 }
  0x78   :  { %v44_v9 = vmul.f32 %v41_v6, %v30_v8 }
  0x7a   :  { %v46_v13 = vmul.f32 %v44_v9, %v44_v9 }
  0x7c   :  { %v48_v17 = vsel %vm47_vm0, %v46_v13, 0.0 }
  0x7d   :  { %v22_v11 = vpop.permute.xlu0 %21  ;;  %v36_v14 = vpop.permute.xlu1 %35 }
  0x7e   :  { %v29_v12 = vsub.f32 %v15_v10, %v22_v11 }
  0x80   :  { %v43_v15 = vmul.f32 %v36_v14, %v29_v12 }
  0x82   :  { %v45_v16 = vmul.f32 %v43_v15, %v43_v15 }
  0x84   :  { %v49_v18 = vadd.f32 %v48_v17, %v45_v16 }
  0x86   :  { %v50_v19 = vrot.slane %v49_v18, 4 }
  0x88   :  { %v51_v20 = vadd.f32 %v50_v19, %v49_v18 }
  0x8a   :  { %v52_v21 = vrot.slane %v51_v20, 2 }
  0x8c   :  { %v53_v22 = vadd.f32 %v52_v21, %v51_v20 }
  0x8e   :  { %v54_v23 = vrot.slane %v53_v22, 1 }
  0x90   :  { %v55_v24 = vadd.f32 %v54_v23, %v53_v22 }
  0x92   :  { %v56_v25 = vmul.f32 0.5, %v55_v24 }
  0x94   :  { %v57_v26 = vsub.f32 -16.848928, %v56_v25 }
  0x96   :  { %58 = vst [vmem:[#allocation2] sm:$0x1] %v57_v26 }
  0x97   :  { %69 = dma.vmem_to_hbm [thread:$0]  %s65_s2, 16, %s67_s0, [#allocation3]  }
  0x98   :  { %103 = dma.done.wait [#allocation3], 16  }
  0x99   :  { %104 = vsyncadd [#allocation3], 4294967280 }
  0x9a   :  { %74 = vsyncpa [#allocation3], 1 }

</bundles_post_ra>
